<compile_context>
chip_gen: v7x
topology: tpu7x:2x2x1
jax: 0.10.0
libtpu: 0.0.40
codegen_flags: <defaults>
</compile_context>

<pallas_src>
import collections
import functools

import jax
import jax.numpy as jnp
from jax.experimental import pallas as pl
from jax.experimental.pallas import tpu as pltpu


_EMB_DIM = 32          # per-table embedding dim (module hard-codes 32)
_EMB_PAD = 128         # 2*32 concatenated embeddings, padded to one lane group
_LINEAR_DOWN = 1024    # module hard-codes linear_down = 1024


def _round_up(x, m):
    return ((x + m - 1) // m) * m


def _batch_tiling(B):
    """Row tile (tm) and padded batch (Bp).  Single grid step for small B,
    <128 rows of padding waste for large B."""
    if B <= 256:
        tm = _round_up(B, 8)
        return tm, tm
    Bp = _round_up(B, 128)
    tm = 256 if Bp % 256 == 0 else 128
    return tm, Bp


ModelConfig = collections.namedtuple(
    "ModelConfig",
    ["feature_channel", "f_pad", "output_channel", "out_pad",
     "n_mid", "if_embedding", "if_norm"])


# ----------------------------------------------------------------------------
# Fused whole-network kernel: one batch tile per grid step, all layers inside.
# ----------------------------------------------------------------------------
def _build_fused_kernel(n_mid, if_embedding):
    def kernel(*refs):
        o_ref = refs[-1]
        it = iter(refs[:-1])

        x = next(it)[...].astype(jnp.bfloat16)                       # (tm, Fp)
        emb = next(it)[...].astype(jnp.bfloat16) if if_embedding else None

        # linear1 (no activation)
        w1, b1 = next(it), next(it)
        h = jnp.dot(x, w1[...], preferred_element_type=jnp.float32) + b1[...]

        # first FCNet_H block (+ fused embedding-concat as a split dot)
        if if_embedding:
            w0a, w0b, b0 = next(it), next(it), next(it)
            a = (jnp.dot(h.astype(jnp.bfloat16), w0a[...],
                         preferred_element_type=jnp.float32)
                 + jnp.dot(emb, w0b[...], preferred_element_type=jnp.float32)
                 + b0[...])
        else:
            w0, b0 = next(it), next(it)
            a = (jnp.dot(h.astype(jnp.bfloat16), w0[...],
                         preferred_element_type=jnp.float32) + b0[...])
        a = jnp.maximum(a, 0.0)

        # mediate blocks (Linear + ReLU)
        for _ in range(n_mid):
            w, b = next(it), next(it)
            a = jnp.maximum(
                jnp.dot(a.astype(jnp.bfloat16), w[...],
                        preferred_element_type=jnp.float32) + b[...], 0.0)

        # last Linear (no activation)
        wl, bl = next(it), next(it)
        out = (jnp.dot(a.astype(jnp.bfloat16), wl[...],
                       preferred_element_type=jnp.float32) + bl[...])
        o_ref[...] = out.astype(o_ref.dtype)

    return kernel


def _fused_forward(x_pad, emb_pad, flat_params, config, tm, Bp):
    f_pad, out_pad = config.f_pad, config.out_pad
    grid = (Bp // tm,)

    arrays = [x_pad]
    in_specs = [pl.BlockSpec((tm, f_pad), lambda i: (i, 0))]
    if config.if_embedding:
        arrays.append(emb_pad)
        in_specs.append(pl.BlockSpec((tm, _EMB_PAD), lambda i: (i, 0)))
    for p in flat_params:
        arrays.append(p)
        # Constant block index -> weight/bias stays VMEM-resident across tiles.
        in_specs.append(pl.BlockSpec(p.shape, lambda i: (0, 0)))

    weight_bytes = sum(int(p.size) * p.dtype.itemsize for p in flat_params)
    matmul_flops = 2 * Bp * sum(int(p.shape[0]) * int(p.shape[1])
                                for p in flat_params if p.shape[0] > 1)
    io_bytes = 4 * (Bp * f_pad + Bp * out_pad)
    if config.if_embedding:
        io_bytes += 4 * Bp * _EMB_PAD

    # VMEM budget from the actual working set (+ headroom), capped at 32 MiB so
    # it stays safe on v7x's 64 MiB/TC while allowing deep buffering elsewhere.
    max_width = max([_LINEAR_DOWN] + [int(p.shape[1]) for p in flat_params])
    tile_io_bytes = 2 * 4 * tm * (f_pad + _EMB_PAD + out_pad)
    act_bytes = 6 * tm * max_width * 4
    vmem_limit = int(min(32 * 2 ** 20,
                         max(8 * 2 ** 20,
                             2 * weight_bytes + tile_io_bytes + act_bytes)))

    kernel = _build_fused_kernel(config.n_mid, config.if_embedding)
    return pl.pallas_call(
        kernel,
        out_shape=jax.ShapeDtypeStruct((Bp, out_pad), jnp.float32),
        grid_spec=pltpu.PrefetchScalarGridSpec(
            num_scalar_prefetch=0,
            grid=grid,
            in_specs=in_specs,
            out_specs=pl.BlockSpec((tm, out_pad), lambda i: (i, 0)),
        ),
        compiler_params=pltpu.CompilerParams(
            dimension_semantics=("parallel",),
            vmem_limit_bytes=vmem_limit,
        ),
        cost_estimate=pl.CostEstimate(
            flops=matmul_flops, transcendentals=0,
            bytes_accessed=weight_bytes + io_bytes),
    )(*arrays)


# ----------------------------------------------------------------------------
# Parameter preparation (once, outside the jitted per-call path)
# ----------------------------------------------------------------------------
def _pad2d(a, rows, cols, dtype):
    a = jnp.asarray(a, jnp.float32)
    out = jnp.zeros((rows, cols), jnp.float32).at[:a.shape[0], :a.shape[1]].set(a)
    return out.astype(dtype)


def prepare_model(raw, feature_channel, output_channel, hidden_list,
                  if_embedding, if_norm):
    """Pre-transpose / pad / bf16-cast every Linear so the fused kernel can use
    them directly. Weight layout per layer: (K_pad, N_pad) bf16; bias (1, N_pad)
    f32. Zero padding keeps padded lanes exactly zero through bias + ReLU."""
    f_pad = _round_up(max(feature_channel, 1), 128)
    hp = [_round_up(h, 128) for h in hidden_list]
    out_pad = _round_up(output_channel, 128)

    flat = []
    w1, b1 = raw["linear1"]                              # (1024, F), (1024,)
    flat.append(_pad2d(w1.T, f_pad, _LINEAR_DOWN, jnp.bfloat16))
    flat.append(_pad2d(b1[None, :], 1, _LINEAR_DOWN, jnp.float32))

    w0, b0 = raw["blocks"][0]                            # (H0, 1024[+64])
    if if_embedding:
        flat.append(_pad2d(w0[:, :_LINEAR_DOWN].T, _LINEAR_DOWN, hp[0],
                           jnp.bfloat16))
        flat.append(_pad2d(w0[:, _LINEAR_DOWN:].T, _EMB_PAD, hp[0],
                           jnp.bfloat16))
    else:
        flat.append(_pad2d(w0.T, _LINEAR_DOWN, hp[0], jnp.bfloat16))
    flat.append(_pad2d(b0[None, :], 1, hp[0], jnp.float32))

    for i in range(1, len(hidden_list)):
        w, b = raw["blocks"][i]
        flat.append(_pad2d(w.T, hp[i - 1], hp[i], jnp.bfloat16))
        flat.append(_pad2d(b[None, :], 1, hp[i], jnp.float32))

    wl, bl = raw["last"]
    flat.append(_pad2d(wl.T, hp[-1], out_pad, jnp.bfloat16))
    flat.append(_pad2d(bl[None, :], 1, out_pad, jnp.float32))

    config = ModelConfig(feature_channel=feature_channel, f_pad=f_pad,
                         output_channel=output_channel, out_pad=out_pad,
                         n_mid=len(hidden_list) - 1,
                         if_embedding=if_embedding, if_norm=if_norm)
    return tuple(flat), config


def _linear_init(key, out_features, in_features):
    kw, kb = jax.random.split(key)
    bound = 1.0 / (in_features ** 0.5)
    w = jax.random.uniform(kw, (out_features, in_features), jnp.float32,
                           minval=-bound, maxval=bound)
    b = jax.random.uniform(kb, (out_features,), jnp.float32,
                           minval=-bound, maxval=bound)
    return w, b


def init_model(key, feature_channel, output_channel, hidden_list,
               if_bn=False, if_dp=False, if_embedding=False):
    # TODO(synk): if_bn / if_dp paths not implemented (module default is False/False).
    assert not if_bn and not if_dp
    n_layers = 1 + len(hidden_list) + 1
    keys = jax.random.split(key, n_layers + 2)

    raw = {}
    raw["linear1"] = _linear_init(keys[0], _LINEAR_DOWN, feature_channel)
    fc_in = _LINEAR_DOWN + (2 * _EMB_DIM if if_embedding else 0)
    dims = [fc_in] + list(hidden_list)
    raw["blocks"] = [_linear_init(keys[1 + i], dims[i + 1], dims[i])
                     for i in range(len(hidden_list))]
    raw["last"] = _linear_init(keys[1 + len(hidden_list)],
                               output_channel, hidden_list[-1])
    emb_tables = ()
    if if_embedding:
        raw["tissue_emb"] = jax.random.normal(keys[-2], (32, _EMB_DIM),
                                              jnp.float32)
        raw["sex_emb"] = jax.random.normal(keys[-1], (4, _EMB_DIM), jnp.float32)
        emb_tables = (raw["tissue_emb"], raw["sex_emb"])
    return raw, emb_tables


# ----------------------------------------------------------------------------
# Full forward (jitted); weights already pre-transposed / padded / bf16.
# ----------------------------------------------------------------------------
@functools.partial(jax.jit, static_argnames=("config",))
def model_forward(flat_params, emb_tables, feature, tissue_index, sex_index,
                  *, config):
    B, F = feature.shape
    tm, Bp = _batch_tiling(B)

    x = jnp.pad(feature.astype(jnp.float32),
                ((0, Bp - B), (0, config.f_pad - F)))
    emb = None
    if config.if_embedding:
        e = jnp.concatenate([jnp.take(emb_tables[0], tissue_index, axis=0),
                             jnp.take(emb_tables[1], sex_index, axis=0)],
                            axis=1)
        emb = jnp.pad(e.astype(jnp.float32),
                      ((0, Bp - B), (0, _EMB_PAD - e.shape[1])))

    out_padded = _fused_forward(x, emb, flat_params, config, tm, Bp)
    out = out_padded[:B, :config.output_channel]

    if config.if_norm:
        # result / sqrt(||result||_1 over the batch dim), per output channel.
        # Kept in JAX on the sliced result so padded batch rows never leak in.
        out = out / jnp.sqrt(jnp.sum(jnp.abs(out), axis=0, keepdims=True))
    return out


# ----------------------------------------------------------------------------
# Pure-JAX reference for correctness checking
# ----------------------------------------------------------------------------
def reference_forward(raw, feature, tissue_index, sex_index, if_embedding,
                      if_norm):
    hp = jax.lax.Precision.HIGHEST
    w, b = raw["linear1"]
    x = jnp.dot(feature, w.T, precision=hp) + b
    if if_embedding:
        x = jnp.concatenate(
            [x, raw["tissue_emb"][tissue_index], raw["sex_emb"][sex_index]],
            axis=1)
    for w, b in raw["blocks"]:
        x = jnp.maximum(jnp.dot(x, w.T, precision=hp) + b, 0.0)
    w, b = raw["last"]
    x = jnp.dot(x, w.T, precision=hp) + b
    if if_norm:
        x = x / jnp.sqrt(jnp.sum(jnp.abs(x), axis=0, keepdims=True))
    return x


if __name__ == "__main__":
    key = jax.random.PRNGKey(0)
    k_params, k_feat, k_t, k_s = jax.random.split(key, 4)

    batch = 16
    feature_channel = 32
    output_channel = 8
    hidden_list = [64, 32]
    if_embedding = True
    if_norm = True

    raw, emb_tables = init_model(
        k_params, feature_channel, output_channel, hidden_list,
        if_bn=False, if_dp=False, if_embedding=if_embedding)
    flat_params, config = prepare_model(
        raw, feature_channel, output_channel, hidden_list,
        if_embedding, if_norm)

    feature = jax.random.normal(k_feat, (batch, feature_channel), jnp.float32)
    tissue_index = jax.random.randint(k_t, (batch,), 0, 32)
    sex_index = jax.random.randint(k_s, (batch,), 0, 4)

    out = model_forward(flat_params, emb_tables, feature, tissue_index,
                        sex_index, config=config)
    out = jax.block_until_ready(out)

    ref = reference_forward(raw, feature, tissue_index, sex_index,
                            if_embedding, if_norm)
    assert out.shape == (batch, output_channel)
    max_err = float(jnp.max(jnp.abs(out - ref)))
    # bf16 weights / activation casts vs HIGHEST-precision f32 reference.
    assert jnp.allclose(out, ref, atol=1e-2, rtol=1e-2), max_err

    print("KERNEL_OK")
</pallas_src>

<mosaic_0001>
module attributes {stable_mosaic.version = 11 : i64} {
  func.func @kernel(%arg0: i32, %arg1: memref<16x128xf32, #tpu.memory_space<vmem>>, %arg2: memref<16x128xf32, #tpu.memory_space<vmem>>, %arg3: memref<128x1024xbf16, #tpu.memory_space<vmem>>, %arg4: memref<1x1024xf32, #tpu.memory_space<vmem>>, %arg5: memref<1024x128xbf16, #tpu.memory_space<vmem>>, %arg6: memref<128x128xbf16, #tpu.memory_space<vmem>>, %arg7: memref<1x128xf32, #tpu.memory_space<vmem>>, %arg8: memref<128x128xbf16, #tpu.memory_space<vmem>>, %arg9: memref<1x128xf32, #tpu.memory_space<vmem>>, %arg10: memref<128x128xbf16, #tpu.memory_space<vmem>>, %arg11: memref<1x128xf32, #tpu.memory_space<vmem>>, %arg12: memref<16x128xf32, #tpu.memory_space<vmem>>) attributes {dimension_semantics = [#tpu.dimension_semantics<parallel>], iteration_bounds = array<i64: 1>, scalar_prefetch = 0 : i64, scratch_operands = 0 : i64, tpu.core_type = #tpu.core_type<tc>, window_params = [{transform_indices = @transform_0, window_bounds = array<i64: 16, 128>}, {transform_indices = @transform_1, window_bounds = array<i64: 16, 128>}, {pipeline_mode = #tpu.pipeline_mode<synchronous>, transform_indices = @transform_2, window_bounds = array<i64: 128, 1024>}, {pipeline_mode = #tpu.pipeline_mode<synchronous>, transform_indices = @transform_3, window_bounds = array<i64: 1, 1024>}, {pipeline_mode = #tpu.pipeline_mode<synchronous>, transform_indices = @transform_4, window_bounds = array<i64: 1024, 128>}, {pipeline_mode = #tpu.pipeline_mode<synchronous>, transform_indices = @transform_5, window_bounds = array<i64: 128, 128>}, {pipeline_mode = #tpu.pipeline_mode<synchronous>, transform_indices = @transform_6, window_bounds = array<i64: 1, 128>}, {pipeline_mode = #tpu.pipeline_mode<synchronous>, transform_indices = @transform_7, window_bounds = array<i64: 128, 128>}, {pipeline_mode = #tpu.pipeline_mode<synchronous>, transform_indices = @transform_8, window_bounds = array<i64: 1, 128>}, {pipeline_mode = #tpu.pipeline_mode<synchronous>, transform_indices = @transform_9, window_bounds = array<i64: 128, 128>}, {pipeline_mode = #tpu.pipeline_mode<synchronous>, transform_indices = @transform_10, window_bounds = array<i64: 1, 128>}, {transform_indices = @transform_11, window_bounds = array<i64: 16, 128>}]} {
    %c0 = arith.constant 0 : index
    %c0_0 = arith.constant 0 : index
    %0 = vector.load %arg1[%c0, %c0_0] : memref<16x128xf32, #tpu.memory_space<vmem>>, vector<16x128xf32>
    %1 = arith.truncf %0 : vector<16x128xf32> to vector<16x128xbf16>
    %c0_1 = arith.constant 0 : index
    %c0_2 = arith.constant 0 : index
    %2 = vector.load %arg2[%c0_1, %c0_2] : memref<16x128xf32, #tpu.memory_space<vmem>>, vector<16x128xf32>
    %3 = arith.truncf %2 : vector<16x128xf32> to vector<16x128xbf16>
    %c0_3 = arith.constant 0 : index
    %c0_4 = arith.constant 0 : index
    %4 = vector.load %arg3[%c0_3, %c0_4] : memref<128x1024xbf16, #tpu.memory_space<vmem>>, vector<128x1024xbf16>
    %cst = arith.constant dense<0.000000e+00> : vector<16x1024xf32>
    %5 = tpu.matmul %1, %4, %cst {dimension_numbers = #tpu.dot_dimension_numbers<[1], [0], [0], [1], [0, 0, 1, 1], [], []>} : vector<16x128xbf16>, vector<128x1024xbf16>, vector<16x1024xf32> -> vector<16x1024xf32>
    %c0_5 = arith.constant 0 : index
    %c0_6 = arith.constant 0 : index
    %6 = vector.load %arg4[%c0_5, %c0_6] : memref<1x1024xf32, #tpu.memory_space<vmem>>, vector<1x1024xf32>
    %7 = vector.broadcast %6 : vector<1x1024xf32> to vector<16x1024xf32>
    %8 = arith.addf %5, %7 : vector<16x1024xf32>
    %9 = arith.truncf %8 : vector<16x1024xf32> to vector<16x1024xbf16>
    %c0_7 = arith.constant 0 : index
    %c0_8 = arith.constant 0 : index
    %10 = vector.load %arg5[%c0_7, %c0_8] : memref<1024x128xbf16, #tpu.memory_space<vmem>>, vector<1024x128xbf16>
    %cst_9 = arith.constant dense<0.000000e+00> : vector<16x128xf32>
    %11 = tpu.matmul %9, %10, %cst_9 {dimension_numbers = #tpu.dot_dimension_numbers<[1], [0], [0], [1], [0, 0, 1, 1], [], []>} : vector<16x1024xbf16>, vector<1024x128xbf16>, vector<16x128xf32> -> vector<16x128xf32>
    %c0_10 = arith.constant 0 : index
    %c0_11 = arith.constant 0 : index
    %12 = vector.load %arg6[%c0_10, %c0_11] : memref<128x128xbf16, #tpu.memory_space<vmem>>, vector<128x128xbf16>
    %cst_12 = arith.constant dense<0.000000e+00> : vector<16x128xf32>
    %13 = tpu.matmul %3, %12, %cst_12 {dimension_numbers = #tpu.dot_dimension_numbers<[1], [0], [0], [1], [0, 0, 1, 1], [], []>} : vector<16x128xbf16>, vector<128x128xbf16>, vector<16x128xf32> -> vector<16x128xf32>
    %14 = arith.addf %11, %13 : vector<16x128xf32>
    %c0_13 = arith.constant 0 : index
    %c0_14 = arith.constant 0 : index
    %15 = vector.load %arg7[%c0_13, %c0_14] : memref<1x128xf32, #tpu.memory_space<vmem>>, vector<1x128xf32>
    %16 = vector.broadcast %15 : vector<1x128xf32> to vector<16x128xf32>
    %17 = arith.addf %14, %16 : vector<16x128xf32>
    %cst_15 = arith.constant 0.000000e+00 : f32
    %18 = vector.broadcast %cst_15 : f32 to vector<16x128xf32>
    %19 = arith.maximumf %17, %18 : vector<16x128xf32>
    %20 = arith.truncf %19 : vector<16x128xf32> to vector<16x128xbf16>
    %c0_16 = arith.constant 0 : index
    %c0_17 = arith.constant 0 : index
    %21 = vector.load %arg8[%c0_16, %c0_17] : memref<128x128xbf16, #tpu.memory_space<vmem>>, vector<128x128xbf16>
    %cst_18 = arith.constant dense<0.000000e+00> : vector<16x128xf32>
    %22 = tpu.matmul %20, %21, %cst_18 {dimension_numbers = #tpu.dot_dimension_numbers<[1], [0], [0], [1], [0, 0, 1, 1], [], []>} : vector<16x128xbf16>, vector<128x128xbf16>, vector<16x128xf32> -> vector<16x128xf32>
    %c0_19 = arith.constant 0 : index
    %c0_20 = arith.constant 0 : index
    %23 = vector.load %arg9[%c0_19, %c0_20] : memref<1x128xf32, #tpu.memory_space<vmem>>, vector<1x128xf32>
    %24 = vector.broadcast %23 : vector<1x128xf32> to vector<16x128xf32>
    %25 = arith.addf %22, %24 : vector<16x128xf32>
    %cst_21 = arith.constant 0.000000e+00 : f32
    %26 = vector.broadcast %cst_21 : f32 to vector<16x128xf32>
    %27 = arith.maximumf %25, %26 : vector<16x128xf32>
    %28 = arith.truncf %27 : vector<16x128xf32> to vector<16x128xbf16>
    %c0_22 = arith.constant 0 : index
    %c0_23 = arith.constant 0 : index
    %29 = vector.load %arg10[%c0_22, %c0_23] : memref<128x128xbf16, #tpu.memory_space<vmem>>, vector<128x128xbf16>
    %cst_24 = arith.constant dense<0.000000e+00> : vector<16x128xf32>
    %30 = tpu.matmul %28, %29, %cst_24 {dimension_numbers = #tpu.dot_dimension_numbers<[1], [0], [0], [1], [0, 0, 1, 1], [], []>} : vector<16x128xbf16>, vector<128x128xbf16>, vector<16x128xf32> -> vector<16x128xf32>
    %c0_25 = arith.constant 0 : index
    %c0_26 = arith.constant 0 : index
    %31 = vector.load %arg11[%c0_25, %c0_26] : memref<1x128xf32, #tpu.memory_space<vmem>>, vector<1x128xf32>
    %32 = vector.broadcast %31 : vector<1x128xf32> to vector<16x128xf32>
    %33 = arith.addf %30, %32 : vector<16x128xf32>
    %c0_27 = arith.constant 0 : index
    %c0_28 = arith.constant 0 : index
    %34 = vector.load %arg12[%c0_27, %c0_28] : memref<16x128xf32, #tpu.memory_space<vmem>>, vector<16x128xf32>
    tpu.vector_store %arg12[%c0_27, %c0_28], %33 {strides = array<i32>} : memref<16x128xf32, #tpu.memory_space<vmem>>, vector<16x128xf32>,
    return
  }
  func.func @transform_0(%arg0: i32) -> (i32, i32) {
    %c0_i32 = arith.constant 0 : i32
    %c0_i32_0 = arith.constant 0 : i32
    return %arg0, %c0_i32 : i32, i32
  }
  func.func @transform_1(%arg0: i32) -> (i32, i32) {
    %c0_i32 = arith.constant 0 : i32
    %c0_i32_0 = arith.constant 0 : i32
    return %arg0, %c0_i32 : i32, i32
  }
  func.func @transform_2(%arg0: i32) -> (i32, i32) {
    %c0_i32 = arith.constant 0 : i32
    %c0_i32_0 = arith.constant 0 : i32
    %c0_i32_1 = arith.constant 0 : i32
    return %c0_i32, %c0_i32_0 : i32, i32
  }
  func.func @transform_3(%arg0: i32) -> (i32, i32) {
    %c0_i32 = arith.constant 0 : i32
    %c0_i32_0 = arith.constant 0 : i32
    %c0_i32_1 = arith.constant 0 : i32
    return %c0_i32, %c0_i32_0 : i32, i32
  }
  func.func @transform_4(%arg0: i32) -> (i32, i32) {
    %c0_i32 = arith.constant 0 : i32
    %c0_i32_0 = arith.constant 0 : i32
    %c0_i32_1 = arith.constant 0 : i32
    return %c0_i32, %c0_i32_0 : i32, i32
  }
  func.func @transform_5(%arg0: i32) -> (i32, i32) {
    %c0_i32 = arith.constant 0 : i32
    %c0_i32_0 = arith.constant 0 : i32
    %c0_i32_1 = arith.constant 0 : i32
    return %c0_i32, %c0_i32_0 : i32, i32
  }
  func.func @transform_6(%arg0: i32) -> (i32, i32) {
    %c0_i32 = arith.constant 0 : i32
    %c0_i32_0 = arith.constant 0 : i32
    %c0_i32_1 = arith.constant 0 : i32
    return %c0_i32, %c0_i32_0 : i32, i32
  }
  func.func @transform_7(%arg0: i32) -> (i32, i32) {
    %c0_i32 = arith.constant 0 : i32
    %c0_i32_0 = arith.constant 0 : i32
    %c0_i32_1 = arith.constant 0 : i32
    return %c0_i32, %c0_i32_0 : i32, i32
  }
  func.func @transform_8(%arg0: i32) -> (i32, i32) {
    %c0_i32 = arith.constant 0 : i32
    %c0_i32_0 = arith.constant 0 : i32
    %c0_i32_1 = arith.constant 0 : i32
    return %c0_i32, %c0_i32_0 : i32, i32
  }
  func.func @transform_9(%arg0: i32) -> (i32, i32) {
    %c0_i32 = arith.constant 0 : i32
    %c0_i32_0 = arith.constant 0 : i32
    %c0_i32_1 = arith.constant 0 : i32
    return %c0_i32, %c0_i32_0 : i32, i32
  }
  func.func @transform_10(%arg0: i32) -> (i32, i32) {
    %c0_i32 = arith.constant 0 : i32
    %c0_i32_0 = arith.constant 0 : i32
    %c0_i32_1 = arith.constant 0 : i32
    return %c0_i32, %c0_i32_0 : i32, i32
  }
  func.func @transform_11(%arg0: i32) -> (i32, i32) {
    %c0_i32 = arith.constant 0 : i32
    %c0_i32_0 = arith.constant 0 : i32
    return %arg0, %c0_i32 : i32, i32
  }
}

</mosaic_0001>

<bundles_post_ra>
// kernel: model_forward.1
= control target key start
LH: loop header
LB: loop body
LE: loop exit
PB: predicated region body
PF: predicated region fallthrough
CT: control target
= control target key end

     0   :  { %16 = vsyncpa [#allocation3], 0  ;;  %s2437_s0 = inlined_call_operand.vmem [shape: f32[16,128], index: 0, kind: input, shape index: {}]   ;;  %s2438_s1 = inlined_call_operand.vmem [shape: f32[16,128], index: 1, kind: input, shape index: {}]   ;;  %s2439_s2 = inlined_call_operand.hbm [shape: bf16[128,1024], index: 2, kind: input, shape index: {}]   ;;  %s2440_s3 = inlined_call_operand.vmem [shape: f32[1,1024], index: 3, kind: input, shape index: {}]   ;;  %s2441_s4 = inlined_call_operand.hbm [shape: bf16[1024,128], index: 4, kind: input, shape index: {}]   ;;  %s2442_s5 = inlined_call_operand.vmem [shape: bf16[128,128], index: 5, kind: input, shape index: {}]   ;;  %s2443_s6 = inlined_call_operand.vmem [shape: f32[1,128], index: 6, kind: input, shape index: {}]   ;;  %s2444_s7 = inlined_call_operand.vmem [shape: bf16[128,128], index: 7, kind: input, shape index: {}]   ;;  %s2445_s8 = inlined_call_operand.vmem [shape: f32[1,128], index: 8, kind: input, shape index: {}]   ;;  %s2446_s9 = inlined_call_operand.vmem [shape: bf16[128,128], index: 9, kind: input, shape index: {}]   ;;  %s2447_s10 = inlined_call_operand.vmem [shape: f32[1,128], index: 10, kind: input, shape index: {}]   ;;  %s2448_s11 = inlined_call_operand.vmem [shape: f32[16,128], index: 11, kind: output, shape index: {}]  }
   0x1   :  { %17 = vsyncpa [#allocation5], 0  ;;  %s2182_s17 = smov [#allocation2]   ;;  %s2134_s21 = scalar_lea.hbm %s2439_s2, 8192 }
   0x2   :  { %s27_s18 = sshll.u32 %s2182_s17, 4  ;;  %p2135_p0 = scmp.ne.s32.totalorder %s2439_s2, %s2134_s21  ;;  %s28_s18 = int_to_ptr.vmem [resolvable:$true] %s27_s18 }
   0x3   :  { %p2138_p1 = scmp.lt.u32.totalorder %s2134_s21, %s2439_s2 }
   0x5   :  { %p2140_p2 = pnand %p2138_p1, %p2135_p0 }
   0x7   :  { %2143 = shalt.err (!%p2140_p2)
}
   0x8   :  { %s2144_s26 = scalar_lea.vmem %s28_s18, 8192  ;;  %p2149_p4 = scmp.lt.s32.totalorder %s28_s18, %s28_s18 }
   0x9   :  { %p2145_p3 = scmp.ne.s32.totalorder %s28_s18, %s2144_s26  ;;  %p2150_p5 = scmp.lt.s32.totalorder %s2144_s26, %s2144_s26 }
   0xb   :  { %p2151_p6 = por %p2150_p5, %p2149_p4 }
   0xd   :  { %p2152_p7 = pnand %p2151_p6, %p2145_p3 }
   0xf   :  { %2155 = shalt.err (!%p2152_p7)
}
  0x10   :  { %s2183_s27 = smov 512   ;;  %s2184_s28 = smov 32  }
  0x11   :  { %33 = dma.hbm_to_vmem [thread:$0]  %s2439_s2, 8192, %s28_s18, [#allocation3], %s2183_s27, %s2183_s27, %s2184_s28  }
  0x12   :  { %s2185_s12 = smov [#allocation4]   ;;  %s2156_s16 = scalar_lea.hbm %s2441_s4, 8192 }
  0x13   :  { %s41_s13 = sshll.u32 %s2185_s12, 4  ;;  %p2157_p8 = scmp.ne.s32.totalorder %s2441_s4, %s2156_s16  ;;  %s42_s13 = int_to_ptr.vmem [resolvable:$true] %s41_s13 }
  0x14   :  { %p2160_p9 = scmp.lt.u32.totalorder %s2156_s16, %s2441_s4 }
  0x16   :  { %p2162_p10 = pnand %p2160_p9, %p2157_p8 }
  0x18   :  { %2165 = shalt.err (!%p2162_p10)
}
  0x19   :  { %s2166_s22 = scalar_lea.vmem %s42_s13, 8192  ;;  %p2171_p12 = scmp.lt.s32.totalorder %s42_s13, %s42_s13 }
  0x1a   :  { %p2167_p11 = scmp.ne.s32.totalorder %s42_s13, %s2166_s22  ;;  %p2172_p13 = scmp.lt.s32.totalorder %s2166_s22, %s2166_s22 }
  0x1c   :  { %p2173_p0 = por %p2172_p13, %p2171_p12 }
  0x1e   :  { %p2174_p1 = pnand %p2173_p0, %p2167_p11 }
  0x20   :  { %2177 = shalt.err (!%p2174_p1)
}
  0x21   :  { %s2186_s2 = smov 64   ;;  %s2187_s18 = smov 4  }
  0x22   :  { %47 = dma.hbm_to_vmem [thread:$0]  %s2441_s4, 8192, %s42_s13, [#allocation5], %s2186_s2, %s2186_s2, %s2187_s18  }
  0x23   :  { %2178 = dma.done.wait [#allocation3], 8192  }
  0x24   :  { %2179 = vsyncadd [#allocation3], 4294959104 }
  0x25   :  { %2180 = dma.done.wait [#allocation5], 8192  }
  0x26   :  { %2181 = vsyncadd [#allocation5], 4294959104  ;;  %v2188_v0 = vmov 0   ;;  %v73_v1 = vld [vmem:[#allocation2] sm:$0xff]  ;;  %v74_v3 = vld [vmem:[#allocation2 + $0x8] sm:$0xff]  ;;  %vm2190_vm0 = vmmov 0  }
  0x27   :  { %531 = vmatprep.mubr.bf16.mxu0 %v2188_v0  ;;  %574 = vmatprep.mubr.bf16.mxu1 %v2188_v0  ;;  %v77_v2 = vld [vmem:[#allocation2 + $0x20] sm:$0xff]  ;;  %v78_v5 = vld [vmem:[#allocation2 + $0x28] sm:$0xff]  ;;  %v75_v60 = vld [vmem:[#allocation2 + $0x10] sm:$0xff] }
  0x28   :  { %v1708_v4 = vcombine.high %v73_v1, %v77_v2  ;;  %v1707_v6 = vcombine.low %v73_v1, %v77_v2  ;;  %v81_v7 = vld [vmem:[#allocation2 + $0x40] sm:$0xff]  ;;  %v1710_v9 = vcombine.high %v74_v3, %v78_v5  ;;  %v1709_v10 = vcombine.low %v74_v3, %v78_v5  ;;  %v82_v12 = vld [vmem:[#allocation2 + $0x48] sm:$0xff]  ;;  %v79_v63 = vld [vmem:[#allocation2 + $0x30] sm:$0xff] }
  0x29   :  { %v85_v8 = vld [vmem:[#allocation2 + $0x60] sm:$0xff]  ;;  %v86_v13 = vld [vmem:[#allocation2 + $0x68] sm:$0xff]  ;;  %v76_v3 = vld [vmem:[#allocation2 + $0x18] sm:$0xff] }
  0x2a   :  { %v1716_v11 = vcombine.high %v81_v7, %v85_v8  ;;  %v89_v14 = vld [vmem:[#allocation2 + $0x80] sm:$0xff]  ;;  %499 = vmatprep.subr.bf16.mxu0 %v1708_v4  ;;  %v1718_v15 = vcombine.high %v82_v12, %v86_v13  ;;  %v90_v17 = vld [vmem:[#allocation2 + $0x88] sm:$0xff]  ;;  %542 = vmatprep.subr.bf16.mxu1 %v1710_v9  ;;  %v1715_v19 = vcombine.low %v81_v7, %v85_v8  ;;  %v80_v4 = vld [vmem:[#allocation2 + $0x38] sm:$0xff] }
  0x2b   :  { %v93_v16 = vld [vmem:[#allocation2 + $0xa0] sm:$0xff]  ;;  %v94_v18 = vld [vmem:[#allocation2 + $0xa8] sm:$0xff]  ;;  %500 = vmatpush1.bf16.msra.mxu0 %v1707_v6  ;;  %543 = vmatpush1.bf16.msra.mxu1 %v1709_v10  ;;  %v1717_v20 = vcombine.low %v82_v12, %v86_v13  ;;  %v1712_v8 = vcombine.high %v75_v60, %v79_v63  ;;  %v83_v9 = vld [vmem:[#allocation2 + $0x50] sm:$0xff]  ;;  %v1714_v10 = vcombine.high %v76_v3, %v80_v4 }
  0x2c   :  { %501 = vmatprep.subr.bf16.mxu0 %v1716_v11  ;;  %v1724_v21 = vcombine.high %v89_v14, %v93_v16  ;;  %544 = vmatprep.subr.bf16.mxu1 %v1718_v15  ;;  %v1726_v22 = vcombine.high %v90_v17, %v94_v18  ;;  %v97_v23 = vld [vmem:[#allocation2 + $0xc0] sm:$0xff]  ;;  %v98_v25 = vld [vmem:[#allocation2 + $0xc8] sm:$0xff]  ;;  %v1723_v27 = vcombine.low %v89_v14, %v93_v16  ;;  %v87_v11 = vld [vmem:[#allocation2 + $0x70] sm:$0xff] }
  0x2d   :  { %v101_v24 = vld [vmem:[#allocation2 + $0xe0] sm:$0xff]  ;;  %v102_v26 = vld [vmem:[#allocation2 + $0xe8] sm:$0xff]  ;;  %v1725_v28 = vcombine.low %v90_v17, %v94_v18  ;;  %v84_v12 = vld [vmem:[#allocation2 + $0x58] sm:$0xff]  ;;  %v1711_v15 = vcombine.low %v75_v60, %v79_v63  ;;  %v1713_v17 = vcombine.low %v76_v3, %v80_v4  ;;  %v1720_v18 = vcombine.high %v83_v9, %v87_v11 }
  0x2e   :  { %v1732_v29 = vcombine.high %v97_v23, %v101_v24  ;;  %v1734_v30 = vcombine.high %v98_v25, %v102_v26  ;;  %v105_v31 = vld [vmem:[#allocation2 + $0x100] sm:$0xff]  ;;  %v106_v33 = vld [vmem:[#allocation2 + $0x108] sm:$0xff]  ;;  %v1731_v35 = vcombine.low %v97_v23, %v101_v24  ;;  %v1733_v36 = vcombine.low %v98_v25, %v102_v26  ;;  %v88_v14 = vld [vmem:[#allocation2 + $0x78] sm:$0xff] }
  0x2f   :  { %502 = vmatpush1.bf16.msra.mxu0 %v1715_v19  ;;  %545 = vmatpush1.bf16.msra.mxu1 %v1717_v20  ;;  %v109_v32 = vld [vmem:[#allocation2 + $0x120] sm:$0xff]  ;;  %v110_v34 = vld [vmem:[#allocation2 + $0x128] sm:$0xff]  ;;  %v91_v16 = vld [vmem:[#allocation2 + $0x90] sm:$0xff]  ;;  %v1722_v20 = vcombine.high %v84_v12, %v88_v14  ;;  %v1719_v23 = vcombine.low %v83_v9, %v87_v11  ;;  %v1721_v25 = vcombine.low %v84_v12, %v88_v14 }
  0x30   :  { %503 = vmatprep.subr.bf16.mxu0 %v1724_v21  ;;  %546 = vmatprep.subr.bf16.mxu1 %v1726_v22  ;;  %v1740_v37 = vcombine.high %v105_v31, %v109_v32  ;;  %v1742_v38 = vcombine.high %v106_v33, %v110_v34  ;;  %v113_v39 = vld [vmem:[#allocation2 + $0x140] sm:$0xff]  ;;  %v114_v41 = vld [vmem:[#allocation2 + $0x148] sm:$0xff]  ;;  %v1739_v43 = vcombine.low %v105_v31, %v109_v32  ;;  %v95_v19 = vld [vmem:[#allocation2 + $0xb0] sm:$0xff] }
  0x31   :  { %v117_v40 = vld [vmem:[#allocation2 + $0x160] sm:$0xff]  ;;  %v118_v42 = vld [vmem:[#allocation2 + $0x168] sm:$0xff]  ;;  %v1741_v44 = vcombine.low %v106_v33, %v110_v34  ;;  %v92_v21 = vld [vmem:[#allocation2 + $0x98] sm:$0xff]  ;;  %v1728_v26 = vcombine.high %v91_v16, %v95_v19  ;;  %v1727_v31 = vcombine.low %v91_v16, %v95_v19 }
  0x32   :  { %v1748_v45 = vcombine.high %v113_v39, %v117_v40  ;;  %v1750_v46 = vcombine.high %v114_v41, %v118_v42  ;;  %v121_v47 = vld [vmem:[#allocation2 + $0x180] sm:$0xff]  ;;  %v122_v49 = vld [vmem:[#allocation2 + $0x188] sm:$0xff]  ;;  %v1747_v51 = vcombine.low %v113_v39, %v117_v40  ;;  %v1749_v52 = vcombine.low %v114_v41, %v118_v42  ;;  %v96_v22 = vld [vmem:[#allocation2 + $0xb8] sm:$0xff] }
  0x33   :  { %504 = vmatpush1.bf16.msra.mxu0 %v1723_v27  ;;  %547 = vmatpush1.bf16.msra.mxu1 %v1725_v28  ;;  %v125_v48 = vld [vmem:[#allocation2 + $0x1a0] sm:$0xff]  ;;  %v126_v50 = vld [vmem:[#allocation2 + $0x1a8] sm:$0xff]  ;;  %v99_v24 = vld [vmem:[#allocation2 + $0xd0] sm:$0xff]  ;;  %v1730_v28 = vcombine.high %v92_v21, %v96_v22  ;;  %v1729_v33 = vcombine.low %v92_v21, %v96_v22 }
  0x34   :  { %505 = vmatprep.subr.bf16.mxu0 %v1732_v29  ;;  %548 = vmatprep.subr.bf16.mxu1 %v1734_v30  ;;  %v1756_v53 = vcombine.high %v121_v47, %v125_v48  ;;  %v129_v54 = vld [vmem:[#allocation2 + $0x1c0] sm:$0xff]  ;;  %v1758_v56 = vcombine.high %v122_v49, %v126_v50  ;;  %v130_v57 = vld [vmem:[#allocation2 + $0x1c8] sm:$0xff]  ;;  %v1755_v59 = vcombine.low %v121_v47, %v125_v48  ;;  %v103_v27 = vld [vmem:[#allocation2 + $0xf0] sm:$0xff] }
  0x35   :  { %v133_v55 = vld [vmem:[#allocation2 + $0x1e0] sm:$0xff]  ;;  %v134_v58 = vld [vmem:[#allocation2 + $0x1e8] sm:$0xff]  ;;  %v1757_v61 = vcombine.low %v122_v49, %v126_v50  ;;  %v100_v29 = vld [vmem:[#allocation2 + $0xd8] sm:$0xff]  ;;  %v1736_v34 = vcombine.high %v99_v24, %v103_v27  ;;  %v1735_v39 = vcombine.low %v99_v24, %v103_v27 }
  0x36   :  { %v1764_v62 = vcombine.high %v129_v54, %v133_v55  ;;  %v1766_v1 = vcombine.high %v130_v57, %v134_v58  ;;  %v67_v2 = vld [vmem:[%s2437_s0] sm:$0xff]  ;;  %v1763_v5 = vcombine.low %v129_v54, %v133_v55  ;;  %v68_v6 = vld [vmem:[%s2437_s0 + $0x8] sm:$0xff]  ;;  %v1765_v7 = vcombine.low %v130_v57, %v134_v58  ;;  %v104_v30 = vld [vmem:[#allocation2 + $0xf8] sm:$0xff] }
  0x37   :  { %506 = vmatpush1.bf16.msra.mxu0 %v1731_v35  ;;  %549 = vmatpush1.bf16.msra.mxu1 %v1733_v36  ;;  %v2283_v13 = vpack.c.bf16 %v68_v6, %v67_v2  ;;  %v107_v32 = vld [vmem:[#allocation2 + $0x110] sm:$0xff]  ;;  %v1738_v36 = vcombine.high %v100_v29, %v104_v30  ;;  %v1737_v41 = vcombine.low %v100_v29, %v104_v30  ;;  %v132_v60 = vld [vmem:[#allocation2 + $0x1d8] sm:$0xff]  ;;  %v2054_v4 = vld [vmem:[#allocation4 + $0x40] sm:$0xff]  }
  0x38   :  { %507 = vmatprep.subr.bf16.mxu0 %v1740_v37  ;;  %550 = vmatprep.subr.bf16.mxu1 %v1742_v38  ;;  %v111_v35 = vld [vmem:[#allocation2 + $0x130] sm:$0xff]  ;;  %v108_v37 = vld [vmem:[#allocation2 + $0x118] sm:$0xff]  ;;  %v2046_v6 = vld [vmem:[%s2442_s5] sm:$0xff]  }
  0x39   :  { %v112_v38 = vld [vmem:[#allocation2 + $0x138] sm:$0xff]  ;;  %v115_v40 = vld [vmem:[#allocation2 + $0x150] sm:$0xff]  ;;  %v1744_v42 = vcombine.high %v107_v32, %v111_v35  ;;  %v2058_v9 = vld [vmem:[#allocation4 + $0x48] sm:$0xff]  }
  0x3a   :  { %v123_v47 = vld [vmem:[#allocation2 + $0x190] sm:$0xff]  ;;  %v1745_v48 = vcombine.low %v108_v37, %v112_v38  ;;  %v2060_v11 = vld [vmem:[#allocation4 + $0x8] sm:$0xff]   ;;  %v2049_v16 = vld [vmem:[%s2442_s5 + $0x18] sm:$0xff]  }
  0x3b   :  { %508 = vmatpush1.bf16.msra.mxu0 %v1739_v43  ;;  %551 = vmatpush1.bf16.msra.mxu1 %v1741_v44  ;;  %v1746_v43 = vcombine.high %v108_v37, %v112_v38  ;;  %v116_v44 = vld [vmem:[#allocation2 + $0x158] sm:$0xff]  ;;  %v127_v50 = vld [vmem:[#allocation2 + $0x1b0] sm:$0xff]  ;;  %v2050_v19 = vld [vmem:[%s2442_s5 + $0x20] sm:$0xff]  }
  0x3c   :  { %509 = vmatprep.subr.bf16.mxu0 %v1748_v45  ;;  %552 = vmatprep.subr.bf16.mxu1 %v1750_v46  ;;  %v120_v45 = vld [vmem:[#allocation2 + $0x178] sm:$0xff]  ;;  %v1743_v46 = vcombine.low %v107_v32, %v111_v35  ;;  %v131_v55 = vld [vmem:[#allocation2 + $0x1d0] sm:$0xff]  ;;  %v1760_v57 = vcombine.high %v123_v47, %v127_v50  ;;  %v2074_v21 = vld [vmem:[#allocation4 + $0x68] sm:$0xff]  }
  0x3d   :  { %v135_v58 = vld [vmem:[#allocation2 + $0x1f0] sm:$0xff]  ;;  %v2051_v22 = vld [vmem:[%s2442_s5 + $0x28] sm:$0xff]   ;;  %v2057_v30 = vld [vmem:[#allocation4 + $0x80] sm:$0xff]  }
  0x3e   :  { %v1767_v3 = vcombine.low %v131_v55, %v135_v58  ;;  %v2062_v12 = vld [vmem:[#allocation4 + $0x50] sm:$0xff]   ;;  %v71_v27 = vld [vmem:[%s2438_s1 + $0x8] sm:$0xff]  ;;  %v2067_v35 = vld [vmem:[#allocation4 + $0xd8] sm:$0xff]  }
  0x3f   :  { %510 = vmatpush1.bf16.msra.mxu0 %v1747_v51  ;;  %553 = vmatpush1.bf16.msra.mxu1 %v1749_v52  ;;  %v1754_v51 = vcombine.high %v116_v44, %v120_v45  ;;  %v124_v52 = vld [vmem:[#allocation2 + $0x198] sm:$0xff]  ;;  %v2048_v14 = vld [vmem:[%s2442_s5 + $0x10] sm:$0xff]   ;;  %v2061_v32 = vld [vmem:[#allocation4 + $0x88] sm:$0xff]  }
  0x40   :  { %511 = vmatprep.subr.bf16.mxu0 %v1756_v53  ;;  %554 = vmatprep.subr.bf16.mxu1 %v1758_v56  ;;  %v128_v53 = vld [vmem:[#allocation2 + $0x1b8] sm:$0xff]  ;;  %v1753_v56 = vcombine.low %v116_v44, %v120_v45  ;;  %v2052_v24 = vld [vmem:[%s2442_s5 + $0x30] sm:$0xff]   ;;  %v2071_v37 = vld [vmem:[#allocation4 + $0xe0] sm:$0xff]  }
  0x41   :  { %v1761_v63 = vcombine.low %v124_v52, %v128_v53  ;;  %v2073_v38 = vld [vmem:[#allocation4 + $0xa0] sm:$0xff]   ;;  %v2082_v44 = vld [vmem:[#allocation4 + $0x78] sm:$0xff]  }
  0x42   :  { %v2083_v45 = vld [vmem:[#allocation4 + $0xf8] sm:$0xff]  }
  0x43   :  { %512 = vmatpush1.bf16.msra.mxu0 %v1755_v59  ;;  %555 = vmatpush1.bf16.msra.mxu1 %v1757_v61  ;;  %v1762_v59 = vcombine.high %v124_v52, %v128_v53  ;;  %v136_v61 = vld [vmem:[#allocation2 + $0x1f8] sm:$0xff]  ;;  %v2337_v53 = vld [vmem:[%s2440_s3] sm:$0xff] }
  0x44   :  { %513 = vmatprep.subr.bf16.mxu0 %v1764_v62  ;;  %556 = vmatprep.subr.bf16.mxu1 %v1766_v1  ;;  %v1759_v62 = vcombine.low %v123_v47, %v127_v50  ;;  %v1768_v1 = vcombine.high %v131_v55, %v135_v58  ;;  %v1770_v2 = vcombine.high %v132_v60, %v136_v61  ;;  %v2085_v47 = vld [vmem:[#allocation4 + $0xb8] sm:$0xff]   ;;  %v139_v50 = vlaneseq }
  0x47   :  { %514 = vmatpush1.bf16.msra.mxu0 %v1763_v5  ;;  %557 = vmatpush1.bf16.msra.mxu1 %v1765_v7  ;;  %v1769_v5 = vcombine.low %v132_v60, %v136_v61  ;;  %v2056_v7 = vld [vmem:[#allocation4] sm:$0xff]  }
  0x48   :  { %585 = vmatprep.subr.bf16.mxu0 %v1712_v8  ;;  %628 = vmatprep.subr.bf16.mxu1 %v1714_v10  ;;  %v2189_v8 = vmov 0.0   ;;  %v2047_v10 = vld [vmem:[%s2442_s5 + $0x8] sm:$0xff]  }
  0x4a   :  { %532 = vmatmul.mubr.bf16.vlgmr.msra.gmra.mrb[0].mxu0 %v2283_v13  ;;  %575 = vmatmul.mubr.bf16.vlgmr.msra.gmra.mrb[0].mxu1 %v2283_v13 }
  0x4b   :  { %586 = vmatpush1.bf16.msra.mxu0 %v1711_v15  ;;  %629 = vmatpush1.bf16.msra.mxu1 %v1713_v17  ;;  %v2064_v15 = vld [vmem:[#allocation4 + $0x10] sm:$0xff]   ;;  %v2068_v17 = vld [vmem:[#allocation4 + $0x18] sm:$0xff]  }
  0x4c   :  { %587 = vmatprep.subr.bf16.mxu0 %v1720_v18  ;;  %630 = vmatprep.subr.bf16.mxu1 %v1722_v20  ;;  %v2070_v18 = vld [vmem:[#allocation4 + $0x60] sm:$0xff]  }
  0x4d   :  { %617 = vmatprep.mubr.bf16.mxu0 %v2188_v0  ;;  %660 = vmatprep.mubr.bf16.mxu1 %v2188_v0  ;;  %v119_v0 = vld [vmem:[#allocation2 + $0x170] sm:$0xff]  ;;  %v2072_v20 = vld [vmem:[#allocation4 + $0x20] sm:$0xff]  }
  0x4e   :  { %v1752_v49 = vcombine.high %v115_v40, %v119_v0  ;;  %v1751_v54 = vcombine.low %v115_v40, %v119_v0  ;;  %v2077_v40 = vld [vmem:[#allocation4 + $0xa8] sm:$0xff]   ;;  %v2080_v0 = vld [vmem:[#allocation4 + $0x30] sm:$0xff]  }
  0x4f   :  { %588 = vmatpush1.bf16.msra.mxu0 %v1719_v23  ;;  %631 = vmatpush1.bf16.msra.mxu1 %v1721_v25  ;;  %v2076_v23 = vld [vmem:[#allocation4 + $0x28] sm:$0xff]   ;;  %v2053_v25 = vld [vmem:[%s2442_s5 + $0x38] sm:$0xff]  }
  0x50   :  { %589 = vmatprep.subr.bf16.mxu0 %v1728_v26  ;;  %632 = vmatprep.subr.bf16.mxu1 %v1730_v28  ;;  %v70_v26 = vld [vmem:[%s2438_s1] sm:$0xff] }
  0x51   :  { %v2055_v28 = vld [vmem:[#allocation4 + $0xc0] sm:$0xff]   ;;  %v72_v29 = vpack.c.bf16 %v71_v27, %v70_v26  ;;  %v2095_v26 = vld [vmem:[#allocation4 + $0x1d0] sm:$0xff]  }
  0x52   :  { %v2096_v27 = vld [vmem:[#allocation4 + $0x110] sm:$0xff]  }
  0x53   :  { %590 = vmatpush1.bf16.msra.mxu0 %v1727_v31  ;;  %633 = vmatpush1.bf16.msra.mxu1 %v1729_v33  ;;  %v2059_v31 = vld [vmem:[#allocation4 + $0xc8] sm:$0xff]   ;;  %v2063_v33 = vld [vmem:[#allocation4 + $0xd0] sm:$0xff]  }
  0x54   :  { %591 = vmatprep.subr.bf16.mxu0 %v1736_v34  ;;  %634 = vmatprep.subr.bf16.mxu1 %v1738_v36  ;;  %v2065_v34 = vld [vmem:[#allocation4 + $0x90] sm:$0xff]   ;;  %v2069_v36 = vld [vmem:[#allocation4 + $0x98] sm:$0xff]  }
  0x57   :  { %592 = vmatpush1.bf16.msra.mxu0 %v1735_v39  ;;  %635 = vmatpush1.bf16.msra.mxu1 %v1737_v41  ;;  %v2075_v39 = vld [vmem:[#allocation4 + $0xe8] sm:$0xff]   ;;  %v2078_v41 = vld [vmem:[#allocation4 + $0x70] sm:$0xff]  }
  0x58   :  { %593 = vmatprep.subr.bf16.mxu0 %v1744_v42  ;;  %636 = vmatprep.subr.bf16.mxu1 %v1746_v43  ;;  %v2079_v42 = vld [vmem:[#allocation4 + $0xf0] sm:$0xff]  }
  0x59   :  { %v2081_v43 = vld [vmem:[#allocation4 + $0xb0] sm:$0xff]  }
  0x5b   :  { %594 = vmatpush1.bf16.msra.mxu0 %v1743_v46  ;;  %637 = vmatpush1.bf16.msra.mxu1 %v1745_v48  ;;  %v2084_v46 = vld [vmem:[#allocation4 + $0x38] sm:$0xff]   ;;  %v2086_v48 = vld [vmem:[#allocation4 + $0x140] sm:$0xff]  }
  0x5c   :  { %595 = vmatprep.subr.bf16.mxu0 %v1752_v49  ;;  %638 = vmatprep.subr.bf16.mxu1 %v1754_v51  ;;  %v2087_v49 = vld [vmem:[#allocation4 + $0x1c0] sm:$0xff]   ;;  %v2331_v51 = vshrl.u32 %v139_v50, 7  ;;  %v2113_v50 = vld [vmem:[#allocation4 + $0x1b0] sm:$0xff]  }
  0x5e   :  { %v141_v52 = vsub.s32 0, %v2331_v51  ;;  %v153_v55 = vsub.s32 3, %v2331_v51 }
  0x5f   :  { %596 = vmatpush1.bf16.msra.mxu0 %v1751_v54  ;;  %639 = vmatpush1.bf16.msra.mxu1 %v1753_v56  ;;  %v149_v54 = vsub.s32 2, %v2331_v51  ;;  %v145_v56 = vsub.s32 1, %v2331_v51 }
  0x60   :  { %597 = vmatprep.subr.bf16.mxu0 %v1760_v57  ;;  %640 = vmatprep.subr.bf16.mxu1 %v1762_v59  ;;  %v142_v57 = vrot.slane %v2337_v53, %v141_v52  ;;  %v154_v59 = vrot.slane %v2337_v53, %v153_v55  ;;  %v2114_v52 = vld [vmem:[#allocation4 + $0x178] sm:$0xff]  }
  0x61   :  { %v150_v58 = vrot.slane %v2337_v53, %v149_v54  ;;  %v146_v61 = vrot.slane %v2337_v53, %v145_v56  ;;  %v2115_v56 = vld [vmem:[#allocation4 + $0x1f8] sm:$0xff]  }
  0x63   :  { %598 = vmatpush1.bf16.msra.mxu0 %v1759_v62  ;;  %641 = vmatpush1.bf16.msra.mxu1 %v1761_v63 }
  0x64   :  { %599 = vmatprep.subr.bf16.mxu0 %v1768_v1  ;;  %642 = vmatprep.subr.bf16.mxu1 %v1770_v2 }
  0x67   :  { %600 = vmatpush1.bf16.msra.mxu0 %v1767_v3  ;;  %643 = vmatpush1.bf16.msra.mxu1 %v1769_v5 }
  0x68   :  { %1977 = vmatprep.subr.bf16.mxu0 %v2189_v8  ;;  %1871 = vmatprep.subr.bf16.mxu1 %v2054_v4 }
  0x6a   :  { %618 = vmatmul.mubr.bf16.vlgmr.msra.gmra.mrb[4].mxu0 %v2283_v13  ;;  %661 = vmatmul.mubr.bf16.vlgmr.msra.gmra.mrb[4].mxu1 %v2283_v13  ;;  %v2066_v13 = vld [vmem:[#allocation4 + $0x58] sm:$0xff]  }
  0x6b   :  { %1978 = vmatpush3.bf16.msra.mxu0 %v2046_v6  ;;  %1993 = vmatprep.mubr.msk.bf16.mxu0 %vm2190_vm0, %v2189_v8 }
  0x6c   :  { %1979 = vmatprep.subr.bf16.mxu0 %v2189_v8  ;;  %1872 = vmatpush3.bf16.msra.mxu1 %v2056_v7 }
  0x6d   :  { %1873 = vmatprep.subr.bf16.mxu1 %v2058_v9 }
  0x6f   :  { %1980 = vmatpush3.bf16.msra.mxu0 %v2047_v10 }
  0x70   :  { %1981 = vmatprep.subr.bf16.mxu0 %v2189_v8  ;;  %1874 = vmatpush3.bf16.msra.mxu1 %v2060_v11 }
  0x71   :  { %1875 = vmatprep.subr.bf16.mxu1 %v2062_v12 }
  0x73   :  { %1982 = vmatpush3.bf16.msra.mxu0 %v2048_v14 }
  0x74   :  { %1983 = vmatprep.subr.bf16.mxu0 %v2189_v8  ;;  %1876 = vmatpush3.bf16.msra.mxu1 %v2064_v15 }
  0x75   :  { %1877 = vmatprep.subr.bf16.mxu1 %v2066_v13 }
  0x77   :  { %1984 = vmatpush3.bf16.msra.mxu0 %v2049_v16 }
  0x78   :  { %1985 = vmatprep.subr.bf16.mxu0 %v2189_v8  ;;  %1878 = vmatpush3.bf16.msra.mxu1 %v2068_v17 }
  0x79   :  { %1879 = vmatprep.subr.bf16.mxu1 %v2070_v18  ;;  %v2088_v18 = vld [vmem:[#allocation4 + $0x100] sm:$0xff]  }
  0x7b   :  { %1986 = vmatpush3.bf16.msra.mxu0 %v2050_v19 }
  0x7c   :  { %1987 = vmatprep.subr.bf16.mxu0 %v2189_v8  ;;  %1880 = vmatpush3.bf16.msra.mxu1 %v2072_v20  ;;  %v2089_v20 = vld [vmem:[#allocation4 + $0x180] sm:$0xff]  }
  0x7d   :  { %1881 = vmatprep.subr.bf16.mxu1 %v2074_v21  ;;  %v2090_v21 = vld [vmem:[#allocation4 + $0x148] sm:$0xff]  }
  0x7f   :  { %1988 = vmatpush3.bf16.msra.mxu0 %v2051_v22  ;;  %v2091_v22 = vld [vmem:[#allocation4 + $0x1c8] sm:$0xff]  }
  0x80   :  { %1989 = vmatprep.subr.bf16.mxu0 %v2189_v8  ;;  %1882 = vmatpush3.bf16.msra.mxu1 %v2076_v23  ;;  %v2092_v23 = vld [vmem:[#allocation4 + $0x108] sm:$0xff]  }
  0x81   :  { %1883 = vmatprep.subr.bf16.mxu1 %v2078_v41  ;;  %v2109_v41 = vld [vmem:[#allocation4 + $0x1a8] sm:$0xff]  }
  0x83   :  { %1990 = vmatpush3.bf16.msra.mxu0 %v2052_v24  ;;  %v2093_v24 = vld [vmem:[#allocation4 + $0x188] sm:$0xff]  }
  0x84   :  { %1991 = vmatprep.subr.bf16.mxu0 %v2189_v8  ;;  %1884 = vmatpush3.bf16.msra.mxu1 %v2080_v0  ;;  %v169_v0 = vsub.s32 7, %v2331_v51 }
  0x85   :  { %1885 = vmatprep.subr.bf16.mxu1 %v2082_v44  ;;  %v161_v44 = vsub.s32 5, %v2331_v51 }
  0x87   :  { %1992 = vmatpush3.bf16.msra.mxu0 %v2053_v25  ;;  %v2094_v25 = vld [vmem:[#allocation4 + $0x150] sm:$0xff]   ;;  %v162_v55 = vrot.slane %v2337_v53, %v161_v44 }
  0x88   :  { %1893 = vmatprep.subr.bf16.mxu0 %v2055_v28  ;;  %1886 = vmatpush3.bf16.msra.mxu1 %v2084_v46  ;;  %v2097_v28 = vld [vmem:[#allocation4 + $0x190] sm:$0xff]  }
  0x89   :  { %1915 = vmatprep.subr.bf16.mxu1 %v2086_v48 }
  0x8a   :  { %1994 = vmatmul.mubr.bf16.vlgmr.msra.gmra.mrb[8].mxu0 %v72_v29  ;;  %v2098_v29 = vld [vmem:[#allocation4 + $0x158] sm:$0xff]  }
  0x8b   :  { %1894 = vmatpush3.bf16.msra.mxu0 %v2057_v30  ;;  %v2099_v30 = vld [vmem:[#allocation4 + $0x1d8] sm:$0xff]  }
  0x8c   :  { %1895 = vmatprep.subr.bf16.mxu0 %v2059_v31  ;;  %v2100_v31 = vld [vmem:[#allocation4 + $0x118] sm:$0xff]  }
  0x8f   :  { %1896 = vmatpush3.bf16.msra.mxu0 %v2061_v32  ;;  %v2101_v32 = vld [vmem:[#allocation4 + $0x198] sm:$0xff]  }
  0x90   :  { %1897 = vmatprep.subr.bf16.mxu0 %v2063_v33  ;;  %v2102_v33 = vld [vmem:[#allocation4 + $0x160] sm:$0xff]  }
  0x93   :  { %1898 = vmatpush3.bf16.msra.mxu0 %v2065_v34  ;;  %v2103_v34 = vld [vmem:[#allocation4 + $0x1e0] sm:$0xff]  }
  0x94   :  { %1899 = vmatprep.subr.bf16.mxu0 %v2067_v35  ;;  %v2104_v35 = vld [vmem:[#allocation4 + $0x120] sm:$0xff]  }
  0x97   :  { %1900 = vmatpush3.bf16.msra.mxu0 %v2069_v36  ;;  %v2105_v36 = vld [vmem:[#allocation4 + $0x1a0] sm:$0xff]  }
  0x98   :  { %1901 = vmatprep.subr.bf16.mxu0 %v2071_v37  ;;  %v2106_v37 = vld [vmem:[#allocation4 + $0x168] sm:$0xff]  }
  0x9b   :  { %1902 = vmatpush3.bf16.msra.mxu0 %v2073_v38  ;;  %v2107_v38 = vld [vmem:[#allocation4 + $0x1e8] sm:$0xff]  }
  0x9c   :  { %1903 = vmatprep.subr.bf16.mxu0 %v2075_v39  ;;  %v2108_v39 = vld [vmem:[#allocation4 + $0x128] sm:$0xff]  }
  0x9f   :  { %1904 = vmatpush3.bf16.msra.mxu0 %v2077_v40  ;;  %v165_v40 = vsub.s32 6, %v2331_v51 }
  0xa0   :  { %1905 = vmatprep.subr.bf16.mxu0 %v2079_v42  ;;  %v157_v42 = vsub.s32 4, %v2331_v51 }
  0xa1   :  { %v166_v46 = vrot.slane %v2337_v53, %v165_v40 }
  0xa2   :  { %v158_v48 = vrot.slane %v2337_v53, %v157_v42 }
  0xa3   :  { %1906 = vmatpush3.bf16.msra.mxu0 %v2081_v43  ;;  %v2110_v43 = vld [vmem:[#allocation4 + $0x170] sm:$0xff]  }
  0xa4   :  { %1907 = vmatprep.subr.bf16.mxu0 %v2083_v45  ;;  %v2111_v45 = vld [vmem:[#allocation4 + $0x1f0] sm:$0xff]  }
  0xa7   :  { %1908 = vmatpush3.bf16.msra.mxu0 %v2085_v47  ;;  %v2112_v47 = vld [vmem:[#allocation4 + $0x130] sm:$0xff]  }
  0xa8   :  { %1937 = vmatprep.subr.bf16.mxu0 %v2087_v49  ;;  %v170_v49 = vrot.slane %v2337_v53, %v169_v0 }
 0x11d   :  { %v533_v60 = vpop.f32.mrb[0].mxu0  ;;  %v576_v63 = vpop.f32.mrb[0].mxu1 }
 0x11e   :  { %v534_v62 = vadd.f32 %v533_v60, %v142_v57  ;;  %v535_v1 = vpop.f32.mrb[1].mxu0  ;;  %v577_v2 = vadd.f32 %v576_v63, %v150_v58  ;;  %v578_v3 = vpop.f32.mrb[1].mxu1 }
 0x11f   :  { %v537_v4 = vpop.f32.mrb[2].mxu0  ;;  %v579_v5 = vadd.f32 %v578_v3, %v154_v59  ;;  %v580_v7 = vpop.f32.mrb[2].mxu1  ;;  %v536_v10 = vadd.f32 %v535_v1, %v146_v61 }
 0x120   :  { %v538_v6 = vadd.f32 %v537_v4, %v142_v57  ;;  %v539_v9 = vpop.f32.mrb[3].mxu0  ;;  %v581_v11 = vadd.f32 %v580_v7, %v150_v58  ;;  %v582_v14 = vpop.f32.mrb[3].mxu1  ;;  %v2117_v4 = vld [vmem:[#allocation4 + $0x1b8] sm:$0xff]  }
 0x121   :  { %v540_v12 = vadd.f32 %v539_v9, %v146_v61  ;;  %v583_v13 = vadd.f32 %v582_v14, %v154_v59  ;;  %v2116_v61 = vld [vmem:[#allocation4 + $0x138] sm:$0xff]  }
 0x122   :  { %v671_v15 = vpack.c.bf16 %v538_v6, %v534_v62  ;;  %v673_v16 = vpack.c.bf16 %v581_v11, %v577_v2 }
 0x123   :  { %v672_v17 = vpack.c.bf16 %v540_v12, %v536_v10  ;;  %v674_v19 = vpack.c.bf16 %v583_v13, %v579_v5 }
 0x125   :  { %1328 = vmatprep.mubr.bf16.mxu1 %v672_v17  ;;  %1369 = vmatprep.mubr.bf16.mxu0 %v674_v19  ;;  %v2119_v19 = vld [vmem:[%s2444_s7 + $0x8] sm:$0xff]  }
 0x126   :  { %1329 = vmatmul.mubr.bf16.vlgmr.msra.gmra.mrb[8].mxu1 %v671_v15  ;;  %1370 = vmatmul.mubr.bf16.vlgmr.msra.gmra.mrb[12].mxu0 %v673_v16 }
 0x127   :  { %1916 = vmatpush3.bf16.msra.mxu1 %v2088_v18  ;;  %1938 = vmatpush3.bf16.msra.mxu0 %v2089_v20  ;;  %v2118_v18 = vld [vmem:[%s2444_s7] sm:$0xff]   ;;  %v2120_v20 = vld [vmem:[%s2444_s7 + $0x10] sm:$0xff]  }
 0x128   :  { %1917 = vmatprep.subr.bf16.mxu1 %v2090_v21  ;;  %1939 = vmatprep.subr.bf16.mxu0 %v2091_v22  ;;  %v2121_v21 = vld [vmem:[%s2444_s7 + $0x18] sm:$0xff]   ;;  %v2122_v22 = vld [vmem:[%s2444_s7 + $0x20] sm:$0xff]  }
 0x12b   :  { %1918 = vmatpush3.bf16.msra.mxu1 %v2092_v23  ;;  %1940 = vmatpush3.bf16.msra.mxu0 %v2093_v24  ;;  %v2123_v23 = vld [vmem:[%s2444_s7 + $0x28] sm:$0xff]   ;;  %v2124_v24 = vld [vmem:[%s2444_s7 + $0x30] sm:$0xff]  }
 0x12c   :  { %1919 = vmatprep.subr.bf16.mxu1 %v2094_v25  ;;  %1941 = vmatprep.subr.bf16.mxu0 %v2095_v26  ;;  %v2125_v25 = vld [vmem:[%s2444_s7 + $0x38] sm:$0xff]   ;;  %v2126_v26 = vld [vmem:[%s2446_s9] sm:$0xff]  }
 0x12f   :  { %1920 = vmatpush3.bf16.msra.mxu1 %v2096_v27  ;;  %1942 = vmatpush3.bf16.msra.mxu0 %v2097_v28  ;;  %v2127_v27 = vld [vmem:[%s2446_s9 + $0x8] sm:$0xff]   ;;  %v2128_v28 = vld [vmem:[%s2446_s9 + $0x10] sm:$0xff]  }
 0x130   :  { %1921 = vmatprep.subr.bf16.mxu1 %v2098_v29  ;;  %1943 = vmatprep.subr.bf16.mxu0 %v2099_v30  ;;  %v2129_v29 = vld [vmem:[%s2446_s9 + $0x18] sm:$0xff]   ;;  %v2130_v30 = vld [vmem:[%s2446_s9 + $0x20] sm:$0xff]  }
 0x133   :  { %1922 = vmatpush3.bf16.msra.mxu1 %v2100_v31  ;;  %1944 = vmatpush3.bf16.msra.mxu0 %v2101_v32  ;;  %v2131_v31 = vld [vmem:[%s2446_s9 + $0x28] sm:$0xff]  }
 0x134   :  { %1923 = vmatprep.subr.bf16.mxu1 %v2102_v33  ;;  %1945 = vmatprep.subr.bf16.mxu0 %v2103_v34 }
 0x137   :  { %1924 = vmatpush3.bf16.msra.mxu1 %v2104_v35  ;;  %1946 = vmatpush3.bf16.msra.mxu0 %v2105_v36 }
 0x138   :  { %1925 = vmatprep.subr.bf16.mxu1 %v2106_v37  ;;  %1947 = vmatprep.subr.bf16.mxu0 %v2107_v38 }
 0x13b   :  { %1926 = vmatpush3.bf16.msra.mxu1 %v2108_v39  ;;  %1948 = vmatpush3.bf16.msra.mxu0 %v2109_v41 }
 0x13c   :  { %1927 = vmatprep.subr.bf16.mxu1 %v2110_v43  ;;  %1949 = vmatprep.subr.bf16.mxu0 %v2111_v45 }
 0x13d   :  { %v619_v54 = vpop.f32.mrb[4].mxu0  ;;  %v662_v57 = vpop.f32.mrb[4].mxu1 }
 0x13e   :  { %v621_v51 = vpop.f32.mrb[5].mxu0  ;;  %v663_v58 = vadd.f32 %v662_v57, %v166_v46  ;;  %v664_v59 = vpop.f32.mrb[5].mxu1  ;;  %v620_v62 = vadd.f32 %v619_v54, %v158_v48 }
 0x13f   :  { %v623_v60 = vpop.f32.mrb[6].mxu0  ;;  %1928 = vmatpush3.bf16.msra.mxu1 %v2112_v47  ;;  %v665_v63 = vadd.f32 %v664_v59, %v170_v49  ;;  %v666_v2 = vpop.f32.mrb[6].mxu1  ;;  %1950 = vmatpush3.bf16.msra.mxu0 %v2113_v50  ;;  %v622_v5 = vadd.f32 %v621_v51, %v162_v55 }
 0x140   :  { %v624_v1 = vadd.f32 %v623_v60, %v158_v48  ;;  %v625_v3 = vpop.f32.mrb[7].mxu0  ;;  %1929 = vmatprep.subr.bf16.mxu1 %v2114_v52  ;;  %v667_v6 = vadd.f32 %v666_v2, %v166_v46  ;;  %v668_v7 = vpop.f32.mrb[7].mxu1  ;;  %1951 = vmatprep.subr.bf16.mxu0 %v2115_v56  ;;  %v1843_v60 = vld [vmem:[%s2443_s6] ss:$0 sm:$0xff] }
 0x141   :  { %v626_v53 = vadd.f32 %v625_v3, %v162_v55  ;;  %v669_v10 = vadd.f32 %v668_v7, %v170_v49  ;;  %v2133_v7 = vld [vmem:[%s2446_s9 + $0x38] sm:$0xff]  }
 0x142   :  { %v675_v9 = vpack.c.bf16 %v624_v1, %v620_v62  ;;  %v677_v11 = vpack.c.bf16 %v667_v6, %v663_v58 }
 0x143   :  { %v676_v12 = vpack.c.bf16 %v626_v53, %v622_v5  ;;  %1930 = vmatpush3.bf16.msra.mxu1 %v2116_v61  ;;  %v678_v14 = vpack.c.bf16 %v669_v10, %v665_v63  ;;  %1952 = vmatpush3.bf16.msra.mxu0 %v2117_v4  ;;  %v2132_v53 = vld [vmem:[%s2446_s9 + $0x30] sm:$0xff]  }
 0x144   :  { %1997 = vmatprep.subr.bf16.mxu1 %v2189_v8  ;;  %2017 = vmatprep.subr.bf16.mxu0 %v2189_v8 }
 0x145   :  { %1410 = vmatprep.mubr.bf16.mxu1 %v676_v12  ;;  %1451 = vmatprep.mubr.bf16.mxu0 %v678_v14 }
 0x146   :  { %1411 = vmatmul.mubr.bf16.vlgmr.msra.gmra.mrb[12].mxu1 %v675_v9  ;;  %1452 = vmatmul.mubr.bf16.vlgmr.msra.gmra.mrb[16].mxu0 %v677_v11  ;;  %v1844_v9 = vld [vmem:[%s2445_s8] ss:$0 sm:$0xff] }
 0x147   :  { %2013 = vmatprep.mubr.msk.bf16.mxu1 %vm2190_vm0, %v2189_v8  ;;  %2033 = vmatprep.mubr.msk.bf16.mxu0 %vm2190_vm0, %v2189_v8 }
 0x148   :  { %1998 = vmatpush3.bf16.msra.mxu1 %v2118_v18  ;;  %2018 = vmatpush3.bf16.msra.mxu0 %v2126_v26 }
 0x149   :  { %1999 = vmatprep.subr.bf16.mxu1 %v2189_v8  ;;  %2019 = vmatprep.subr.bf16.mxu0 %v2189_v8 }
 0x14c   :  { %2000 = vmatpush3.bf16.msra.mxu1 %v2119_v19  ;;  %2020 = vmatpush3.bf16.msra.mxu0 %v2127_v27 }
 0x14d   :  { %2001 = vmatprep.subr.bf16.mxu1 %v2189_v8  ;;  %2021 = vmatprep.subr.bf16.mxu0 %v2189_v8 }
 0x150   :  { %2002 = vmatpush3.bf16.msra.mxu1 %v2120_v20  ;;  %2022 = vmatpush3.bf16.msra.mxu0 %v2128_v28 }
 0x151   :  { %2003 = vmatprep.subr.bf16.mxu1 %v2189_v8  ;;  %2023 = vmatprep.subr.bf16.mxu0 %v2189_v8 }
 0x154   :  { %2004 = vmatpush3.bf16.msra.mxu1 %v2121_v21  ;;  %2024 = vmatpush3.bf16.msra.mxu0 %v2129_v29 }
 0x155   :  { %2005 = vmatprep.subr.bf16.mxu1 %v2189_v8  ;;  %2025 = vmatprep.subr.bf16.mxu0 %v2189_v8 }
 0x158   :  { %2006 = vmatpush3.bf16.msra.mxu1 %v2122_v22  ;;  %2026 = vmatpush3.bf16.msra.mxu0 %v2130_v30 }
 0x159   :  { %2007 = vmatprep.subr.bf16.mxu1 %v2189_v8  ;;  %2027 = vmatprep.subr.bf16.mxu0 %v2189_v8 }
 0x15c   :  { %2008 = vmatpush3.bf16.msra.mxu1 %v2123_v23  ;;  %2028 = vmatpush3.bf16.msra.mxu0 %v2131_v31 }
 0x15d   :  { %v905_v15 = vpop.f32.mrb[8].mxu0  ;;  %2009 = vmatprep.subr.bf16.mxu1 %v2189_v8  ;;  %2029 = vmatprep.subr.bf16.mxu0 %v2189_v8 }
 0x15e   :  { %v1995_v13 = vpop.f32.mrb[9].mxu0 }
 0x15f   :  { %v908_v16 = vpop.f32.mrb[10].mxu0 }
 0x160   :  { %v1996_v17 = vpop.f32.mrb[11].mxu0  ;;  %2010 = vmatpush3.bf16.msra.mxu1 %v2124_v24  ;;  %2030 = vmatpush3.bf16.msra.mxu0 %v2132_v53 }
 0x161   :  { %2011 = vmatprep.subr.bf16.mxu1 %v2189_v8  ;;  %2031 = vmatprep.subr.bf16.mxu0 %v2189_v8  ;;  %v1853_v8 = vld [vmem:[%s2447_s10] ss:$0 sm:$0xff] }
 0x164   :  { %2012 = vmatpush3.bf16.msra.mxu1 %v2125_v25  ;;  %2032 = vmatpush3.bf16.msra.mxu0 %v2133_v7 }
 0x1f9   :  { %v1887_v32 = vpop.f32.mrb[8].mxu1  ;;  %v1909_v33 = vpop.f32.mrb[12].mxu0 }
 0x1fa   :  { %v1888_v34 = vpop.f32.mrb[9].mxu1  ;;  %v1910_v36 = vpop.f32.mrb[13].mxu0 }
 0x1fb   :  { %v1889_v35 = vadd.f32 %v1888_v34, %v1887_v32  ;;  %v1890_v37 = vpop.f32.mrb[10].mxu1  ;;  %v1911_v38 = vadd.f32 %v1910_v36, %v1909_v33  ;;  %v1912_v39 = vpop.f32.mrb[14].mxu0 }
 0x1fc   :  { %v1891_v40 = vpop.f32.mrb[11].mxu1  ;;  %v1913_v0 = vpop.f32.mrb[15].mxu0 }
 0x1fd   :  { %v1331_v41 = vadd.f32 %v1889_v35, %v905_v15  ;;  %v1892_v42 = vadd.f32 %v1891_v40, %v1890_v37  ;;  %v1914_v43 = vadd.f32 %v1913_v0, %v1912_v39 }
 0x1ff   :  { %v1372_v44 = vadd.f32 %v1911_v38, %v1331_v41  ;;  %v1334_v45 = vadd.f32 %v1892_v42, %v908_v16 }
 0x201   :  { %v1375_v46 = vadd.f32 %v1914_v43, %v1334_v45 }
 0x219   :  { %v1931_v47 = vpop.f32.mrb[12].mxu1  ;;  %v1953_v48 = vpop.f32.mrb[16].mxu0 }
 0x21a   :  { %v1932_v49 = vpop.f32.mrb[13].mxu1  ;;  %v1954_v52 = vpop.f32.mrb[17].mxu0 }
 0x21b   :  { %v1933_v50 = vadd.f32 %v1932_v49, %v1931_v47  ;;  %v1934_v54 = vpop.f32.mrb[14].mxu1  ;;  %v1955_v55 = vadd.f32 %v1954_v52, %v1953_v48  ;;  %v1956_v56 = vpop.f32.mrb[18].mxu0 }
 0x21c   :  { %v1935_v57 = vpop.f32.mrb[15].mxu1  ;;  %v1957_v59 = vpop.f32.mrb[19].mxu0 }
 0x21d   :  { %v1413_v51 = vadd.f32 %v1933_v50, %v1372_v44  ;;  %v1936_v58 = vadd.f32 %v1935_v57, %v1934_v54  ;;  %v1958_v61 = vadd.f32 %v1957_v59, %v1956_v56 }
 0x21f   :  { %v1454_v62 = vadd.f32 %v1955_v55, %v1413_v51  ;;  %v1416_v63 = vadd.f32 %v1936_v58, %v1375_v46 }
 0x221   :  { %v1467_v1 = vadd.f32 %v1843_v60, %v1454_v62  ;;  %v1457_v2 = vadd.f32 %v1958_v61, %v1416_v63 }
 0x223   :  { %v1468_v3 = vadd.f32 %v1843_v60, %v1457_v2  ;;  %v1469_v4 = vmax.f32 %v1467_v1, 0.0 }
 0x225   :  { %v1470_v5 = vmax.f32 %v1468_v3, 0.0 }
 0x227   :  { %v1471_v6 = vpack.c.bf16 %v1470_v5, %v1469_v4 }
 0x229   :  { %2014 = vmatmul.mubr.bf16.vlgmr.msra.gmra.mrb[16].mxu1 %v1471_v6 }
 0x2fc   :  { %v1577_v10 = vpop.f32.mrb[16].mxu1 }
 0x2fd   :  { %v1578_v11 = vadd.f32 %v1844_v9, %v1577_v10  ;;  %v2015_v12 = vpop.f32.mrb[17].mxu1 }
 0x2fe   :  { %v1580_v14 = vpop.f32.mrb[18].mxu1 }
 0x2ff   :  { %v1581_v15 = vadd.f32 %v1844_v9, %v1580_v14  ;;  %v2016_v13 = vpop.f32.mrb[19].mxu1  ;;  %v1584_v16 = vmax.f32 %v1578_v11, 0.0 }
 0x301   :  { %v1585_v17 = vmax.f32 %v1581_v15, 0.0 }
 0x303   :  { %v1586_v18 = vpack.c.bf16 %v1585_v17, %v1584_v16 }
 0x305   :  { %2034 = vmatmul.mubr.bf16.vlgmr.msra.gmra.mrb[20].mxu0 %v1586_v18 }
 0x3d8   :  { %v1692_v19 = vpop.f32.mrb[20].mxu0 }
 0x3d9   :  { %v1693_v20 = vadd.f32 %v1853_v8, %v1692_v19  ;;  %v2035_v21 = vpop.f32.mrb[21].mxu0 }
 0x3da   :  { %v1695_v22 = vpop.f32.mrb[22].mxu0 }
 0x3db   :  { %1699 = vst [vmem:[%s2448_s11] sm:$0xff] %v1693_v20  ;;  %v1696_v23 = vadd.f32 %v1853_v8, %v1695_v22  ;;  %v2036_v24 = vpop.f32.mrb[23].mxu0 }
 0x3dd   :  { %1700 = vst [vmem:[%s2448_s11 + $0x8] sm:$0xff] %v1696_v23 }
 0x3de   :  { %1705 = vsyncpa [#allocation3], 1 }
 0x3df   :  { %1706 = vsyncpa [#allocation5], 1 }

</bundles_post_ra>
